<compile_context>
chip_gen: v6e
topology: v6e:2x2x1
jax: 0.10.0
libtpu: 0.0.40
codegen_flags: <defaults>
</compile_context>

<pallas_src>
import jax
import jax.numpy as jnp
from jax.experimental import pallas as pl
from jax.experimental.pallas import tpu as pltpu

LANE = 128     # lane width (last dim)
SUBLANE = 8    # sublane width (second-to-last dim)
MAX_TB = 512   # max batch-tile rows


def _round_up(n, m):
    return ((n + m - 1) // m) * m


def siml_mlp_kernel(x_ref, w1_ref, b1_ref, w2_ref, b2_ref, o_ref):
    # Linear 1: bf16 x bf16 -> f32 accumulation on the MXU; bias + ReLU in f32.
    h = jnp.dot(x_ref[...], w1_ref[...], preferred_element_type=jnp.float32)
    h = jnp.maximum(h + b1_ref[...], 0.0)
    # Linear 2 — the 0.7 classical-branch scale is already folded into w2/b2.
    # Cast h to bf16 so this matmul also takes the fast bf16 MXU path.
    y = jnp.dot(h.astype(w2_ref.dtype), w2_ref[...],
                preferred_element_type=jnp.float32)
    o_ref[...] = (y + b2_ref[...]).astype(o_ref.dtype)


def init_params(key, input_size, hidden_size, output_size):
    """Deterministic init mimicking nn.Linear's uniform(-1/sqrt(fan_in), 1/sqrt(fan_in))."""
    k1, k2, k3, k4 = jax.random.split(key, 4)
    lim1 = 1.0 / jnp.sqrt(jnp.float32(input_size))
    lim2 = 1.0 / jnp.sqrt(jnp.float32(hidden_size))
    w1 = jax.random.uniform(k1, (input_size, hidden_size), jnp.float32, -lim1, lim1)
    b1 = jax.random.uniform(k2, (1, hidden_size), jnp.float32, -lim1, lim1)
    w2 = jax.random.uniform(k3, (hidden_size, output_size), jnp.float32, -lim2, lim2)
    b2 = jax.random.uniform(k4, (1, output_size), jnp.float32, -lim2, lim2)
    return w1, b1, w2, b2


def prepare_params(w1, b1, w2, b2):
    """One-time transform:
      * fold the 0.7 classical-branch scale into w2/b2,
      * zero-pad hidden/output feature dims to lane multiples (128),
      * keep w1's contraction dim UNPADDED (in_size is a legal full-dim block),
      * cast weights to bf16; biases stay f32 for the f32 epilogue.
    """
    in_size, hidden = w1.shape
    _, out_size = w2.shape
    hid_p = _round_up(hidden, LANE)
    out_p = _round_up(out_size, LANE)

    w1p = jnp.zeros((in_size, hid_p), jnp.float32).at[:, :hidden].set(w1)
    b1p = jnp.zeros((1, hid_p), jnp.float32).at[:, :hidden].set(b1)
    w2p = jnp.zeros((hid_p, out_p), jnp.float32).at[:hidden, :out_size].set(0.7 * w2)
    b2p = jnp.zeros((1, out_p), jnp.float32).at[:, :out_size].set(0.7 * b2)
    return w1p.astype(jnp.bfloat16), b1p, w2p.astype(jnp.bfloat16), b2p


def _choose_tb(b_pad):
    """Batch tile: multiple of 8, capped at MAX_TB. When the batch fits in <= 2
    max tiles, split it so grid >= 2 and both v7x TensorCores get work."""
    if b_pad <= 2 * SUBLANE:
        return SUBLANE
    if b_pad <= 2 * MAX_TB:
        return min(MAX_TB, _round_up((b_pad + 1) // 2, SUBLANE))
    return MAX_TB


def siml_forward(x, params, out_size):
    """Runs 0.7 * (ReLU(x @ W1 + b1) @ W2 + b2) through the Pallas kernel.

    `params` must be the padded / pre-scaled / bf16-cast tuple from `prepare_params`.
    (For tiny batches a plain jnp expression would beat the launch overhead; the
    kernel path is kept unconditionally here for demonstration.)
    """
    w1p, b1p, w2p, b2p = params
    B, in_size = x.shape
    assert w1p.shape[0] == in_size
    hid_p = w1p.shape[1]
    out_p = w2p.shape[1]

    # Pad the batch only (to a sublane multiple); feature dim stays unpadded.
    b_pad = _round_up(B, SUBLANE)
    tb = _choose_tb(b_pad)
    grid = (pl.cdiv(b_pad, tb),)

    x_c = x.astype(jnp.bfloat16)
    if b_pad != B:
        x_c = jnp.pad(x_c, ((0, b_pad - B), (0, 0)))

    flops = 2 * b_pad * (in_size * hid_p + hid_p * out_p)
    bytes_accessed = (x_c.size * 2 + w1p.size * 2 + w2p.size * 2
                      + b1p.size * 4 + b2p.size * 4 + b_pad * out_p * 4)

    out = pl.pallas_call(
        siml_mlp_kernel,
        out_shape=jax.ShapeDtypeStruct((b_pad, out_p), jnp.float32),
        grid=grid,
        in_specs=[
            pl.BlockSpec((tb, in_size), lambda i: (i, 0)),     # stream batch tiles
            pl.BlockSpec((in_size, hid_p), lambda i: (0, 0)),  # weights stay VMEM-resident
            pl.BlockSpec((1, hid_p), lambda i: (0, 0)),
            pl.BlockSpec((hid_p, out_p), lambda i: (0, 0)),
            pl.BlockSpec((1, out_p), lambda i: (0, 0)),
        ],
        out_specs=pl.BlockSpec((tb, out_p), lambda i: (i, 0)),
        compiler_params=pltpu.CompilerParams(
            dimension_semantics=("parallel",),                 # shard batch over TCs (v7x)
        ),
        cost_estimate=pl.CostEstimate(
            flops=flops, transcendentals=0, bytes_accessed=bytes_accessed),
    )(x_c, w1p, b1p, w2p, b2p)

    # Slice away batch / lane padding.
    return out[:B, :out_size]


if __name__ == "__main__":
    input_size, hidden_size, output_size = 16, 32, 8
    batch = 2

    key = jax.random.PRNGKey(0)
    kx, kp = jax.random.split(key)
    x = jax.random.normal(kx, (batch, input_size), jnp.float32)
    w1, b1, w2, b2 = init_params(kp, input_size, hidden_size, output_size)

    params = prepare_params(w1, b1, w2, b2)   # one-time: fold 0.7, pad, cast to bf16
    out = siml_forward(x, params, output_size)
    jax.block_until_ready(out)

    # Reference mirroring the kernel's numerics exactly (bf16 inputs, f32 accum,
    # 0.7 folded into w2/b2).
    w1p, b1p, w2p, b2p = params
    xf = x.astype(jnp.bfloat16).astype(jnp.float32)
    h_ref = jnp.maximum(xf @ w1p.astype(jnp.float32) + b1p, 0.0)
    y_ref = h_ref.astype(jnp.bfloat16).astype(jnp.float32) @ w2p.astype(jnp.float32) + b2p
    ref = y_ref[:, :output_size]

    assert out.shape == (batch, output_size)
    assert jnp.allclose(out, ref, atol=1e-4, rtol=1e-4)

    # Loose sanity check vs. the pure-f32 classical branch (bf16 rounding only).
    ref_f32 = 0.7 * (jnp.maximum(x @ w1 + b1, 0.0) @ w2 + b2)
    assert jnp.allclose(out, ref_f32, atol=5e-2, rtol=5e-2)

    print("KERNEL_OK")
</pallas_src>

<mosaic_0001>
module attributes {stable_mosaic.version = 11 : i64} {
  func.func @siml_mlp_kernel(%arg0: i32, %arg1: memref<8x16xbf16, #tpu.memory_space<vmem>>, %arg2: memref<16x128xbf16, #tpu.memory_space<vmem>>, %arg3: memref<1x128xf32, #tpu.memory_space<vmem>>, %arg4: memref<128x128xbf16, #tpu.memory_space<vmem>>, %arg5: memref<1x128xf32, #tpu.memory_space<vmem>>, %arg6: memref<8x128xf32, #tpu.memory_space<vmem>>) attributes {dimension_semantics = [#tpu.dimension_semantics<parallel>], iteration_bounds = array<i64: 1>, scalar_prefetch = 0 : i64, scratch_operands = 0 : i64, tpu.core_type = #tpu.core_type<tc>, window_params = [{transform_indices = @transform_0, window_bounds = array<i64: 8, 16>}, {pipeline_mode = #tpu.pipeline_mode<synchronous>, transform_indices = @transform_1, window_bounds = array<i64: 16, 128>}, {pipeline_mode = #tpu.pipeline_mode<synchronous>, transform_indices = @transform_2, window_bounds = array<i64: 1, 128>}, {pipeline_mode = #tpu.pipeline_mode<synchronous>, transform_indices = @transform_3, window_bounds = array<i64: 128, 128>}, {pipeline_mode = #tpu.pipeline_mode<synchronous>, transform_indices = @transform_4, window_bounds = array<i64: 1, 128>}, {transform_indices = @transform_5, window_bounds = array<i64: 8, 128>}]} {
    %c0 = arith.constant 0 : index
    %c0_0 = arith.constant 0 : index
    %0 = vector.load %arg1[%c0, %c0_0] : memref<8x16xbf16, #tpu.memory_space<vmem>>, vector<8x16xbf16>
    %c0_1 = arith.constant 0 : index
    %c0_2 = arith.constant 0 : index
    %1 = vector.load %arg2[%c0_1, %c0_2] : memref<16x128xbf16, #tpu.memory_space<vmem>>, vector<16x128xbf16>
    %cst = arith.constant dense<0.000000e+00> : vector<8x128xf32>
    %2 = tpu.matmul %0, %1, %cst {dimension_numbers = #tpu.dot_dimension_numbers<[1], [0], [0], [1], [0, 0, 1, 1], [], []>} : vector<8x16xbf16>, vector<16x128xbf16>, vector<8x128xf32> -> vector<8x128xf32>
    %c0_3 = arith.constant 0 : index
    %c0_4 = arith.constant 0 : index
    %3 = vector.load %arg3[%c0_3, %c0_4] : memref<1x128xf32, #tpu.memory_space<vmem>>, vector<1x128xf32>
    %4 = vector.broadcast %3 : vector<1x128xf32> to vector<8x128xf32>
    %5 = arith.addf %2, %4 : vector<8x128xf32>
    %cst_5 = arith.constant 0.000000e+00 : f32
    %6 = vector.broadcast %cst_5 : f32 to vector<8x128xf32>
    %7 = arith.maximumf %5, %6 : vector<8x128xf32>
    %8 = arith.truncf %7 : vector<8x128xf32> to vector<8x128xbf16>
    %c0_6 = arith.constant 0 : index
    %c0_7 = arith.constant 0 : index
    %9 = vector.load %arg4[%c0_6, %c0_7] : memref<128x128xbf16, #tpu.memory_space<vmem>>, vector<128x128xbf16>
    %cst_8 = arith.constant dense<0.000000e+00> : vector<8x128xf32>
    %10 = tpu.matmul %8, %9, %cst_8 {dimension_numbers = #tpu.dot_dimension_numbers<[1], [0], [0], [1], [0, 0, 1, 1], [], []>} : vector<8x128xbf16>, vector<128x128xbf16>, vector<8x128xf32> -> vector<8x128xf32>
    %c0_9 = arith.constant 0 : index
    %c0_10 = arith.constant 0 : index
    %11 = vector.load %arg5[%c0_9, %c0_10] : memref<1x128xf32, #tpu.memory_space<vmem>>, vector<1x128xf32>
    %12 = vector.broadcast %11 : vector<1x128xf32> to vector<8x128xf32>
    %13 = arith.addf %10, %12 : vector<8x128xf32>
    %c0_11 = arith.constant 0 : index
    %c0_12 = arith.constant 0 : index
    %14 = vector.load %arg6[%c0_11, %c0_12] : memref<8x128xf32, #tpu.memory_space<vmem>>, vector<8x128xf32>
    tpu.vector_store %arg6[%c0_11, %c0_12], %13 {strides = array<i32>} : memref<8x128xf32, #tpu.memory_space<vmem>>, vector<8x128xf32>,
    return
  }
  func.func @transform_0(%arg0: i32) -> (i32, i32) {
    %c0_i32 = arith.constant 0 : i32
    %c0_i32_0 = arith.constant 0 : i32
    return %arg0, %c0_i32 : i32, i32
  }
  func.func @transform_1(%arg0: i32) -> (i32, i32) {
    %c0_i32 = arith.constant 0 : i32
    %c0_i32_0 = arith.constant 0 : i32
    %c0_i32_1 = arith.constant 0 : i32
    return %c0_i32, %c0_i32_0 : i32, i32
  }
  func.func @transform_2(%arg0: i32) -> (i32, i32) {
    %c0_i32 = arith.constant 0 : i32
    %c0_i32_0 = arith.constant 0 : i32
    %c0_i32_1 = arith.constant 0 : i32
    return %c0_i32, %c0_i32_0 : i32, i32
  }
  func.func @transform_3(%arg0: i32) -> (i32, i32) {
    %c0_i32 = arith.constant 0 : i32
    %c0_i32_0 = arith.constant 0 : i32
    %c0_i32_1 = arith.constant 0 : i32
    return %c0_i32, %c0_i32_0 : i32, i32
  }
  func.func @transform_4(%arg0: i32) -> (i32, i32) {
    %c0_i32 = arith.constant 0 : i32
    %c0_i32_0 = arith.constant 0 : i32
    %c0_i32_1 = arith.constant 0 : i32
    return %c0_i32, %c0_i32_0 : i32, i32
  }
  func.func @transform_5(%arg0: i32) -> (i32, i32) {
    %c0_i32 = arith.constant 0 : i32
    %c0_i32_0 = arith.constant 0 : i32
    return %arg0, %c0_i32 : i32, i32
  }
}

</mosaic_0001>

<bundles_post_ra>
// kernel: tpu_custom_call.1
= control target key start
LH: loop header
LB: loop body
LE: loop exit
PB: predicated region body
PF: predicated region fallthrough
CT: control target
= control target key end

     0   :  { %10 = vsyncpa [#allocation3], 0  ;;  %s459_s0 = inlined_call_operand.hbm [shape: bf16[8,16], index: 0, kind: input, shape index: {}]   ;;  %s460_s1 = inlined_call_operand.hbm [shape: bf16[16,128], index: 1, kind: input, shape index: {}]   ;;  %s461_s2 = inlined_call_operand.vmem [shape: f32[1,128], index: 2, kind: input, shape index: {}]   ;;  %s462_s3 = inlined_call_operand.hbm [shape: bf16[128,128], index: 3, kind: input, shape index: {}]   ;;  %s463_s4 = inlined_call_operand.vmem [shape: f32[1,128], index: 4, kind: input, shape index: {}]   ;;  %s464_s5 = inlined_call_operand.hbm [shape: f32[8,128], index: 5, kind: output, shape index: {}]  }
   0x1   :  { %11 = vsyncpa [#allocation6], 0 }
   0x2   :  { %12 = vsyncpa [#allocation4], 0  ;;  %s403_s18 = smov [#allocation5]  }
   0x3   :  { %s28_s19 = sshll.u32 %s403_s18, 4  ;;  %s29_s19 = int_to_ptr.vmem [resolvable:$true] %s28_s19 }
   0x4   :  { %s325_s20 = scalar_lea.vmem %s29_s19, 128  ;;  %p330_p1 = scmp.lt.s32.totalorder %s29_s19, %s29_s19 }
   0x5   :  { %p326_p0 = scmp.ne.s32.totalorder %s29_s19, %s325_s20  ;;  %p331_p2 = scmp.lt.s32.totalorder %s325_s20, %s325_s20 }
   0x7   :  { %p332_p3 = por %p331_p2, %p330_p1 }
   0x9   :  { %p333_p4 = pnand %p332_p3, %p326_p0 }
   0xb   :  { %336 = shalt.err (!%p333_p4)
}
   0xc   :  { %s404_s21 = smov 64   ;;  %s405_s22 = smov 4  }
   0xd   :  { %34 = dma.hbm_to_vmem [thread:$0]  %s460_s1, 128, %s29_s19, [#allocation6], %s404_s21, %s404_s21, %s405_s22  }
   0xe   :  { %s406_s25 = smov [#allocation2]   ;;  %s407_s27 = smov [#allocation7]  }
   0xf   :  { %s19_s26 = sshll.u32 %s406_s25, 4  ;;  %s42_s28 = sshll.u32 %s407_s27, 4  ;;  %s20_s26 = int_to_ptr.vmem [resolvable:$true] %s19_s26  ;;  %s43_s28 = int_to_ptr.vmem [resolvable:$true] %s42_s28 }
  0x10   :  { %s345_s29 = scalar_lea.vmem %s20_s26, 64  ;;  %p350_p6 = scmp.lt.s32.totalorder %s20_s26, %s20_s26 }
  0x11   :  { %p346_p5 = scmp.ne.s32.totalorder %s20_s26, %s345_s29  ;;  %p351_p7 = scmp.lt.s32.totalorder %s345_s29, %s345_s29 }
  0x13   :  { %p352_p8 = por %p351_p7, %p350_p6 }
  0x15   :  { %p353_p9 = pnand %p352_p8, %p346_p5 }
  0x17   :  { %356 = shalt.err (!%p353_p9)
}
  0x18   :  { %22 = dma.hbm_to_vmem [thread:$0]  %s459_s0, 64, %s20_s26, [#allocation3]  }
  0x19   :  { %s365_s7 = scalar_lea.vmem %s43_s28, 1024  ;;  %p370_p11 = scmp.lt.s32.totalorder %s43_s28, %s43_s28 }
  0x1a   :  { %p366_p10 = scmp.ne.s32.totalorder %s43_s28, %s365_s7  ;;  %p371_p12 = scmp.lt.s32.totalorder %s365_s7, %s365_s7 }
  0x1c   :  { %p372_p13 = por %p371_p12, %p370_p11 }
  0x1e   :  { %p373_p0 = pnand %p372_p13, %p366_p10 }
  0x20   :  { %376 = shalt.err (!%p373_p0)
}
  0x21   :  { %48 = dma.hbm_to_vmem [thread:$0]  %s462_s3, 1024, %s43_s28, [#allocation6], %s404_s21, %s404_s21, %s405_s22  }
  0x22   :  { %397 = dma.done.wait [#allocation3], 64  }
  0x23   :  { %398 = vsyncadd [#allocation3], 4294967232 }
  0x24   :  { %399 = dma.done.wait [#allocation6], 1152  }
  0x25   :  { %400 = vsyncadd [#allocation6], 4294966144  ;;  %v408_v0 = vmov 0.0   ;;  %vm409_vm0 = vmmov 0   ;;  %v308_v1 = vld [vmem:[#allocation5] sm:$0xff]   ;;  %vm77_vm1 = vcmask 130048  }
  0x26   :  { %274 = vmatprep.subr.bf16.mxu0 %v408_v0  ;;  %276 = vmatprep.mubr.msk.bf16.mxu0 %vm409_vm0, %v408_v0  ;;  %v61_v2 = vld [vmem:[#allocation2] sm:$0xf]  ;;  %v309_v3 = vld [vmem:[#allocation7 + $0x38] sm:$0xff]   ;;  %v311_v5 = vld [vmem:[#allocation7 + $0x28] sm:$0xff]   ;;  %s410_s11 = smov [#allocation8]  }
  0x27   :  { %280 = vmatprep.subr.bf16.mxu1 %v408_v0  ;;  %296 = vmatprep.mubr.msk.bf16.mxu1 %vm409_vm0, %v408_v0  ;;  %v310_v4 = vld [vmem:[#allocation7 + $0x30] sm:$0xff]   ;;  %v312_v6 = vld [vmem:[#allocation7 + $0x20] sm:$0xff]   ;;  %v313_v7 = vld [vmem:[#allocation7 + $0x18] sm:$0xff]   ;;  %s241_s12 = sshll.u32 %s410_s11, 4  ;;  %s242_s12 = int_to_ptr.vmem [resolvable:$true] %s241_s12 }
  0x28   :  { %275 = vmatpush3.bf16.msra.mxu0 %v308_v1  ;;  %281 = vmatpush3.bf16.msra.mxu1 %v309_v3  ;;  %v314_v8 = vld [vmem:[#allocation7 + $0x10] sm:$0xff]   ;;  %v315_v9 = vld [vmem:[#allocation7 + $0x8] sm:$0xff]   ;;  %v316_v10 = vld [vmem:[#allocation7] sm:$0xff]   ;;  %p382_p2 = scmp.lt.s32.totalorder %s242_s12, %s242_s12 }
  0x29   :  { %282 = vmatprep.subr.bf16.mxu1 %v408_v0  ;;  %v251_v11 = vld [vmem:[%s461_s2] ss:$0 sm:$0xff]  ;;  %s377_s2 = scalar_lea.vmem %s242_s12, 128 }
  0x2a   :  { %v254_v19 = vld [vmem:[%s463_s4] ss:$0 sm:$0xff]  ;;  %p378_p1 = scmp.ne.s32.totalorder %s242_s12, %s377_s2  ;;  %p383_p3 = scmp.lt.s32.totalorder %s377_s2, %s377_s2 }
  0x2b   :  { %277 = vmatmul.mubr.msk.bf16.vlgmr.msra.gmra.mxu0 %vm77_vm1, %v61_v2 }
  0x2c   :  { %283 = vmatpush3.bf16.msra.mxu1 %v310_v4  ;;  %p384_p4 = por %p383_p3, %p382_p2 }
  0x2d   :  { %284 = vmatprep.subr.bf16.mxu1 %v408_v0 }
  0x2e   :  { %p385_p5 = pnand %p384_p4, %p378_p1 }
  0x30   :  { %285 = vmatpush3.bf16.msra.mxu1 %v311_v5 }
  0x31   :  { %286 = vmatprep.subr.bf16.mxu1 %v408_v0 }
  0x34   :  { %287 = vmatpush3.bf16.msra.mxu1 %v312_v6 }
  0x35   :  { %288 = vmatprep.subr.bf16.mxu1 %v408_v0 }
  0x38   :  { %289 = vmatpush3.bf16.msra.mxu1 %v313_v7 }
  0x39   :  { %290 = vmatprep.subr.bf16.mxu1 %v408_v0 }
  0x3c   :  { %291 = vmatpush3.bf16.msra.mxu1 %v314_v8 }
  0x3d   :  { %292 = vmatprep.subr.bf16.mxu1 %v408_v0 }
  0x40   :  { %293 = vmatpush3.bf16.msra.mxu1 %v315_v9 }
  0x41   :  { %294 = vmatprep.subr.bf16.mxu1 %v408_v0 }
  0x44   :  { %295 = vmatpush3.bf16.msra.mxu1 %v316_v10 }
  0xeb   :  { %v115_v12 = vpop.f32.mrf.mxu0 }
  0xec   :  { %v116_v13 = vadd.f32 %v251_v11, %v115_v12 }
  0xed   :  { %v278_v14 = vpop.f32.mrf.mxu0 }
  0xee   :  { %v121_v15 = vmax.f32 %v116_v13, 0.0 }
  0xef   :  { %v118_v16 = vpop.f32.mrf.mxu0 }
  0xf0   :  { %v122_v17 = vpack.c.bf16 %v121_v15, %v121_v15 }
  0xf1   :  { %v279_v18 = vpop.f32.mrf.mxu0 }
  0xf2   :  { %297 = vmatmul.mubr.bf16.vlgmr.msra.gmra.mxu1 %v122_v17 }
 0x1b2   :  { %v228_v20 = vpop.f32.mrf.mxu1 }
 0x1b3   :  { %v229_v21 = vadd.f32 %v254_v19, %v228_v20 }
 0x1b4   :  { %v298_v22 = vpop.f32.mrf.mxu1 }
 0x1b5   :  { %234 = vst [vmem:[#allocation8] sm:$0xff] %v229_v21 }
 0x1b6   :  { %v231_v23 = vpop.f32.mrf.mxu1 }
 0x1b7   :  { %388 = shalt.err (!%p385_p5)
}
 0x1b8   :  { %244 = dma.vmem_to_hbm [thread:$0]  %s242_s12, 128, %s464_s5, [#allocation4]   ;;  %v299_v24 = vpop.f32.mrf.mxu1 }
 0x1b9   :  { %401 = dma.done.wait [#allocation4], 128  }
 0x1ba   :  { %402 = vsyncadd [#allocation4], 4294967168 }
 0x1bb   :  { %248 = vsyncpa [#allocation3], 1 }
 0x1bc   :  { %249 = vsyncpa [#allocation6], 1 }
 0x1bd   :  { %250 = vsyncpa [#allocation4], 1 }

</bundles_post_ra>
